<compile_context>
chip_gen: v6e
topology: v6e:2x2x1
jax: 0.10.0
libtpu: 0.0.40
codegen_flags: <defaults>
</compile_context>

<pallas_src>
import jax
import jax.numpy as jnp
from jax.experimental import pallas as pl
from jax.experimental.pallas import tpu as pltpu


# ---------------------------------------------------------------------------
# Pallas kernel:  out(C_out, t_hw) = W(C_out, C_in) @ X(C_in, t_hw) + b(C_out,1)
# X tile is cast to bf16 in-register (W already bf16); f32 MXU accumulation;
# f32 output written lane-dense along the HW axis.
# ---------------------------------------------------------------------------
def _lateral_conv_kernel(x_ref, w_ref, b_ref, o_ref):
    x = x_ref[...].astype(jnp.bfloat16)
    acc = jnp.dot(w_ref[...], x, preferred_element_type=jnp.float32)
    o_ref[...] = (acc + b_ref[...]).astype(o_ref.dtype)


def lateral_conv_1x1(x_nchw, w_oc_ic, b_oc1, *, max_hw_tile=1024):
    """1x1 conv + bias on an NCHW tensor, no transposes.

    x_nchw:  (N, C_in, H, W)   f32 or bf16
    w_oc_ic: (C_out, C_in)     bf16
    b_oc1:   (C_out, 1)        f32
    returns  (N, C_out, H, W)  f32
    """
    N, C_in, H, W = x_nchw.shape
    C_out = w_oc_ic.shape[0]
    HW = H * W

    # Free view: NCHW is already contiguous as (N, C, H*W).
    x3d = x_nchw.reshape(N, C_in, HW)

    # HW tile: full extent when small, else a 128-multiple capped at ~1024
    # (fits v7x's 64 MiB VMEM with headroom even for C_in up to 2048).
    if HW <= max_hw_tile:
        t_hw = HW                      # block == full dim -> always legal
    else:
        t_hw = max_hw_tile             # multiple of 128; ragged edge is masked
    n_hw = pl.cdiv(HW, t_hw)

    out3d = pl.pallas_call(
        _lateral_conv_kernel,
        out_shape=jax.ShapeDtypeStruct((N, C_out, HW), jnp.float32),
        grid_spec=pltpu.PrefetchScalarGridSpec(
            num_scalar_prefetch=0,
            grid=(N, n_hw),
            in_specs=[
                # activation tile: batch squeezed, full C_in, hw tile
                pl.BlockSpec((None, C_in, t_hw), lambda b, j: (b, 0, j)),
                # full (tiny) weight, resident
                pl.BlockSpec((C_out, C_in), lambda b, j: (0, 0)),
                # bias column, broadcasts over lanes
                pl.BlockSpec((C_out, 1), lambda b, j: (0, 0)),
            ],
            out_specs=pl.BlockSpec((None, C_out, t_hw), lambda b, j: (b, 0, j)),
        ),
        compiler_params=pltpu.CompilerParams(
            dimension_semantics=("parallel", "parallel"),
            vmem_limit_bytes=48 * 1024 * 1024,
        ),
    )(x3d, w_oc_ic, b_oc1)

    return out3d.reshape(N, C_out, H, W)


# ---------------------------------------------------------------------------
# Minimal concrete Neck (JAX side), mirroring the abstract-base contract:
#   forward: Dict[str, Tensor] -> Dict[str, Tensor]
# ---------------------------------------------------------------------------
class SimpleLateralNeck:
    def __init__(self, in_feature_channels, in_feature_strides, out_channels, key):
        self._in_features = list(in_feature_channels.keys())
        self._out_features = [f"p{name[-1]}" for name in self._in_features]
        self._out_feature_channels = {f: out_channels for f in self._out_features}
        self._out_feature_strides = {
            f"p{name[-1]}": in_feature_strides[name] for name in in_feature_strides
        }

        # Deterministic parameter init (kaiming-ish scaling).
        # Weights stored transposed (C_out, C_in) in bf16 for the kernel.
        self.params = {}
        for name in self._in_features:
            c_in = in_feature_channels[name]
            key, wk = jax.random.split(key)
            w = jax.random.normal(wk, (out_channels, c_in), jnp.float32) * (
                1.0 / jnp.sqrt(c_in)
            )
            w = w.astype(jnp.bfloat16)
            bias = jnp.zeros((out_channels, 1), jnp.float32)
            self.params[name] = (w, bias)

    def forward(self, bottom_up_features):
        out = {}
        for in_name, out_name in zip(self._in_features, self._out_features):
            w, b = self.params[in_name]
            out[out_name] = lateral_conv_1x1(bottom_up_features[in_name], w, b)
        return out

    def output_shape(self):
        return {
            name: dict(
                channels=self._out_feature_channels[name],
                stride=self._out_feature_strides[name],
            )
            for name in self._out_features
        }

    @property
    def padding_constraints(self):
        return {"size_divisiblity": 0, "square_size": 0}


# ---------------------------------------------------------------------------
# Reference (pure jnp) mirroring the kernel's dtype handling.
# ---------------------------------------------------------------------------
def _ref_lateral(x_nchw, w_oc_ic, b_oc1):
    xb = x_nchw.astype(jnp.bfloat16).astype(jnp.float32)
    wb = w_oc_ic.astype(jnp.float32)
    out = jnp.einsum("oc,nchw->nohw", wb, xb)
    return out + b_oc1.reshape(1, -1, 1, 1)


if __name__ == "__main__":
    key = jax.random.PRNGKey(0)
    key, k3, k4 = jax.random.split(key, 3)

    # Small synthetic bottom-up features (NCHW), like a tiny backbone output.
    bottom_up = {
        "res3": jax.random.normal(k3, (2, 4, 16, 16), jnp.float32),
        "res4": jax.random.normal(k4, (2, 8, 8, 8), jnp.float32),
    }
    in_channels = {"res3": 4, "res4": 8}
    in_strides = {"res3": 8, "res4": 16}

    neck = SimpleLateralNeck(in_channels, in_strides, out_channels=8, key=key)
    outs = neck.forward(bottom_up)
    jax.block_until_ready(outs)

    ok = True
    for in_name, out_name in zip(neck._in_features, neck._out_features):
        w, b = neck.params[in_name]
        ref = _ref_lateral(bottom_up[in_name], w, b)
        got = outs[out_name]
        if got.shape != ref.shape or not jnp.allclose(got, ref, atol=1e-4, rtol=1e-4):
            ok = False

    if ok:
        print("KERNEL_OK")
    else:
        print("KERNEL_MISMATCH")
</pallas_src>

<mosaic_0001>
module attributes {stable_mosaic.version = 11 : i64} {
  func.func @_lateral_conv_kernel(%arg0: i32, %arg1: i32, %arg2: memref<1x4x256xf32, #tpu.memory_space<vmem>>, %arg3: memref<8x4xbf16, #tpu.memory_space<vmem>>, %arg4: memref<8x1xf32, #tpu.memory_space<vmem>>, %arg5: memref<1x8x256xf32, #tpu.memory_space<vmem>>) attributes {dimension_semantics = [#tpu.dimension_semantics<parallel>, #tpu.dimension_semantics<parallel>], iteration_bounds = array<i64: 2, 1>, scalar_prefetch = 0 : i64, scratch_operands = 0 : i64, tpu.core_type = #tpu.core_type<tc>, window_params = [{transform_indices = @transform_0, window_bounds = array<i64: 1, 4, 256>}, {pipeline_mode = #tpu.pipeline_mode<synchronous>, transform_indices = @transform_1, window_bounds = array<i64: 8, 4>}, {pipeline_mode = #tpu.pipeline_mode<synchronous>, transform_indices = @transform_2, window_bounds = array<i64: 8, 1>}, {transform_indices = @transform_3, window_bounds = array<i64: 1, 8, 256>}]} {
    %c0 = arith.constant 0 : index
    %c0_0 = arith.constant 0 : index
    %c0_1 = arith.constant 0 : index
    %0 = vector.load %arg2[%c0, %c0_0, %c0_1] : memref<1x4x256xf32, #tpu.memory_space<vmem>>, vector<1x4x256xf32>
    %1 = vector.shape_cast %0 : vector<1x4x256xf32> to vector<4x256xf32>
    %2 = arith.truncf %1 : vector<4x256xf32> to vector<4x256xbf16>
    %c0_2 = arith.constant 0 : index
    %c0_3 = arith.constant 0 : index
    %3 = vector.load %arg3[%c0_2, %c0_3] : memref<8x4xbf16, #tpu.memory_space<vmem>>, vector<8x4xbf16>
    %cst = arith.constant dense<0.000000e+00> : vector<8x256xf32>
    %4 = tpu.matmul %3, %2, %cst {dimension_numbers = #tpu.dot_dimension_numbers<[1], [0], [0], [1], [0, 0, 1, 1], [], []>} : vector<8x4xbf16>, vector<4x256xbf16>, vector<8x256xf32> -> vector<8x256xf32>
    %c0_4 = arith.constant 0 : index
    %c0_5 = arith.constant 0 : index
    %5 = vector.load %arg4[%c0_4, %c0_5] : memref<8x1xf32, #tpu.memory_space<vmem>>, vector<8x1xf32>
    %6 = vector.broadcast %5 : vector<8x1xf32> to vector<8x256xf32>
    %7 = arith.addf %4, %6 : vector<8x256xf32>
    %c0_6 = arith.constant 0 : index
    %c0_7 = arith.constant 0 : index
    %c0_8 = arith.constant 0 : index
    %8 = vector.load %arg5[%c0_6, %c0_7, %c0_8] : memref<1x8x256xf32, #tpu.memory_space<vmem>>, vector<1x8x256xf32>
    %9 = vector.shape_cast %8 : vector<1x8x256xf32> to vector<8x256xf32>
    %10 = vector.shape_cast %7 : vector<8x256xf32> to vector<1x8x256xf32>
    tpu.vector_store %arg5[%c0_6, %c0_7, %c0_8], %10 {strides = array<i32>} : memref<1x8x256xf32, #tpu.memory_space<vmem>>, vector<1x8x256xf32>,
    return
  }
  func.func @transform_0(%arg0: i32, %arg1: i32) -> (i32, i32, i32) {
    %c0_i32 = arith.constant 0 : i32
    %c0_i32_0 = arith.constant 0 : i32
    return %arg0, %c0_i32, %arg1 : i32, i32, i32
  }
  func.func @transform_1(%arg0: i32, %arg1: i32) -> (i32, i32) {
    %c0_i32 = arith.constant 0 : i32
    %c0_i32_0 = arith.constant 0 : i32
    %c0_i32_1 = arith.constant 0 : i32
    return %c0_i32, %c0_i32_0 : i32, i32
  }
  func.func @transform_2(%arg0: i32, %arg1: i32) -> (i32, i32) {
    %c0_i32 = arith.constant 0 : i32
    %c0_i32_0 = arith.constant 0 : i32
    %c0_i32_1 = arith.constant 0 : i32
    return %c0_i32, %c0_i32_0 : i32, i32
  }
  func.func @transform_3(%arg0: i32, %arg1: i32) -> (i32, i32, i32) {
    %c0_i32 = arith.constant 0 : i32
    %c0_i32_0 = arith.constant 0 : i32
    return %arg0, %c0_i32, %arg1 : i32, i32, i32
  }
}

</mosaic_0001>

<bundles_post_ra>
// kernel: tpu_custom_call.1
= control target key start
LH: loop header
LB: loop body
LE: loop exit
PB: predicated region body
PF: predicated region fallthrough
CT: control target
= control target key end

     0   :  { %8 = vsyncpa [#allocation3], 0  ;;  %s746_s0 = inlined_call_operand.hbm [shape: f32[2,4,256], index: 0, kind: input, shape index: {}]   ;;  %s747_s1 = inlined_call_operand.vmem [shape: bf16[8,4], index: 1, kind: input, shape index: {}]   ;;  %s748_s2 = inlined_call_operand.vmem [shape: f32[8,1], index: 2, kind: input, shape index: {}]   ;;  %s749_s3 = inlined_call_operand.hbm [shape: f32[2,8,256], index: 3, kind: output, shape index: {}]  }
   0x1   :  { %10 = vsyncpa [#allocation3 + $0x1], 0 }
   0x2   :  { %11 = vsyncpa [#allocation4], 0 }
   0x3   :  { %13 = vsyncpa [#allocation4 + $0x1], 0  ;;  %s593_s12 = smov 0   ;;  %s595_s13 = smov 0  }
   0x4   :  { %s597_s14 = smov 0   ;;  %s599_s15 = smov 0  }
   0x5   :  { %s601_s16 = smov 0   ;;  %s603_s17 = smov 0  }
   0x6 LB: > { %s376_s18 = sadd.s32 4294967295, %s568_s17   ;;  %s377_s19 = sadd.s32 4294967294, %s568_s17   ;;  %s568_s17 = sphi %s603_s17, %s19_s17   ;;  %s564_s16 = sphi %s601_s16, %s761_s16   ;;  %s560_s15 = sphi %s599_s15, %s760_s15   ;;  %s556_s14 = sphi %s597_s14, %s759_s14   ;;  %s552_s13 = sphi %s595_s13, %s758_s13   ;;  %s548_s12 = sphi %s593_s12, %s757_s12  }
   0x7   : > { %s31_s20 = sadd.s32 1, %s564_s16  ;;  %s40_s21 = sadd.s32 1, %s556_s14 }
   0x8   : > { %p33_p0 = scmp.ge.s32.totalorder %s31_s20, 2  ;;  %p47_p1 = scmp.ne.s32.totalorder %s556_s14, %s552_s13 }
   0x9   : > { %p48_p2 = scmp.eq.s32.totalorder %s568_s17, 0  ;;  %p53_p3 = scmp.ne.s32.totalorder %s552_s13, %s548_s12 }
   0xa   : > { %s763_s20 = smov (%p33_p0, %s31_s20), 0  ;;  %p54_p5 = scmp.eq.s32.totalorder %s376_s18, 0 }
   0xb   : > { %p634_p4 = por %p48_p2, %p47_p1  ;;  %s35_s23 = ssub.s32 %s564_s16, %s763_s20 }
   0xc   : > { %p121_p6 = scmp.eq.s32.totalorder %s376_s18, 1  ;;  %p38_p7 = scmp.eq.s32.totalorder %s35_s23, 0 }
   0xd   : > { %p640_p8 = por %p54_p5, %p53_p3  ;;  %p127_p10 = scmp.eq.s32.totalorder %s377_s19, 1 }
   0xe   : > { %p644_p9 = por %p121_p6, %p47_p1  ;;  %p407_p13 = scmp.lt.s32.totalorder %s568_s17, 2 }
   0xf   : > { %s649_s26 = scalar_select %p38_p7, %s556_s14, %s40_s21  }
  0x10   : > { %p651_p11 = por %p127_p10, %p53_p3  ;;  %s153_s28 = sand.u32 1, %s556_s14  }
  0x11   : > { %s380_s29 = sshll.u32 %s153_s28, 3  ;;  %s393_s30 = sshll.u32 %s564_s16, 7 }
  0x12   : > { %s753_s27 = scalar_select %p651_p11, 1, 0 }
  0x13   : > { %s165_s6 = scalar_lea.hbm %s746_s0, %s393_s30  ;;  %s157_s7 = scalar_lea.vmem [#allocation2], %s380_s29 }
  0x14   : > { %s167_s8 = sshll.u32 %s157_s7, 4  ;;  %p664_p0 = pnand %p407_p13, %p634_p4  ;;  %s168_s8 = int_to_ptr.vmem [resolvable:$true] %s167_s8 }
  0x15   : > { %p383_p1 = scmp.ge.s32.totalorder %s568_s17, 1  ;;  %p172_p2 = scmp.lt.s32.totalorder %s568_s17, 3 }
  0x16   : > { %s154_s10 = scalar_lea.sflag [#allocation3], %s153_s28  ;;  %p462_p3 = pneg %p664_p0 }
  0x17   : > { %s473_s11 = scalar_lea.vmem %s168_s8, 128  ;;  %s570_s18 = smov [#allocation2]  }
  0x18   : > { %p474_p5 = scmp.ne.s32.totalorder %s168_s8, %s473_s11  ;;  %s478_s19 = sshll.u32 %s570_s18, 4  ;;  %s479_s19 = int_to_ptr.vmem [resolvable:$false] %s478_s19 }
  0x19   : > { %s480_s21 = scalar_lea.vmem %s479_s19, 256  ;;  %p481_p10 = scmp.lt.s32.totalorder %s168_s8, %s479_s19 }
  0x1a   : > { %p476_p6 = pnand %p474_p5, %p462_p3  ;;  %p482_p12 = scmp.lt.s32.totalorder %s480_s21, %s473_s11 }
  0x1c   : > { %p477_p7 = pneg %p476_p6  ;;  %p483_p4 = por %p482_p12, %p481_p10 }
  0x1e   : > { %p484_p13 = pnand %p483_p4, %p477_p7 }
  0x20   : > { %487 = shalt.err (!%p484_p13)
}
  0x21   : > { %402 = dma.hbm_to_vmem [thread:$0]  (!%p664_p0), %s165_s6, 128, %s168_s8, %s154_s10  }
  0x22   : > { %p173_p11 = pnand %p383_p1, %p172_p2 }
  0x23   : > { %s679_s22 = sand.u32 (!%p173_p11), 1, %s552_s13  }
  0x24   : > { %176 = sbr.rel (%p173_p11) target bundleno = 262 (0x106), region = 32  ;;  %s384_s23 = sshll.u32 (!%p173_p11), %s679_s22, 3 }
  0x25   : > { %s179_s28 = scalar_lea.sflag (!%p173_p11), [#allocation3], %s679_s22  ;;  %s182_s29 = scalar_lea.vmem (!%p173_p11), [#allocation2], %s384_s23 }
  0x29   : > { %539 = dma.done.wait (%p640_p8), %s179_s28, 128  }
  0x2a   : > { %541 = vsyncadd (%p640_p8), %s179_s28, 4294967168  ;;  %v571_v0 = vmov 0   ;;  %v208_v1 = vld [vmem:[%s182_s29] sm:$0xff]  ;;  %vm225_vm0 = vcmask 1041408   ;;  %vm221_vm1 = vcmask 31744   ;;  %s385_s6 = sshll.u32 %s679_s22, 4 }
  0x2b   : > { %264 = vmatprep.mubr.bf16.mxu0 %v571_v0  ;;  %458 = vset.pattern.permute.xlu0 %v571_v0  ;;  %v215_v2 = vld [vmem:[%s748_s2] sm:$0xff]  ;;  %v210_v3 = vcombine.high %v208_v1, %v208_v1  ;;  %v212_v4 = vpack.c.bf16 %v208_v1, %v208_v1  ;;  %s394_s7 = sshll.u32 %s560_s15, 8  ;;  %s204_s8 = scalar_lea.vmem [#allocation5], %s385_s6 }
  0x2c   : > { %218 = vperm.xlu0 %458, %v215_v2   ;;  %v214_v7 = vld [vmem:[%s747_s1] sm:$0xf]  ;;  %s292_s9 = sshll.u32 %s204_s8, 4  ;;  %s698_s18 = scalar_lea.hbm %s749_s3, %s394_s7  ;;  %s700_s9 = int_to_ptr.vmem [resolvable:$true] %s292_s9 }
  0x2d   : > { %v213_v5 = vpack.c.bf16 %v210_v3, %v210_v3  ;;  %v227_v6 = vsel %vm225_vm0, %v212_v4, 0  ;;  %s276_s15 = scalar_lea.sflag [#allocation4], %s679_s22  ;;  %s488_s19 = scalar_lea.vmem %s700_s9, 256 }
  0x2e   : > { %p489_p8 = scmp.ne.s32.totalorder %s700_s9, %s488_s19  ;;  %s572_s21 = smov [#allocation5]  }
  0x2f   : > { %386 = vmatprep.subr.msk.bf16.mxu0 %vm225_vm0, %v213_v5  ;;  %s492_s23 = sshll.u32 %s572_s21, 4  ;;  %s493_s23 = int_to_ptr.vmem [resolvable:$false] %s492_s23 }
  0x30   : > { %247 = vmatpush1.bf16.msra.mxu0 %v227_v6  ;;  %p490_p11 = pnand %p489_p8, %p644_p9  ;;  %s494_s28 = scalar_lea.vmem %s493_s23, 512 }
  0x31   : > { %p495_p0 = scmp.lt.s32.totalorder %s700_s9, %s493_s23  ;;  %p496_p1 = scmp.lt.s32.totalorder %s494_s28, %s488_s19 }
  0x32   : > { %p491_p12 = pneg %p490_p11 }
  0x33   : > { %387 = vmatmul.mubr.msk.bf16.vlgmr.msra.gmra.mxu0 %vm221_vm1, %v214_v7  ;;  %p497_p2 = por %p496_p1, %p495_p0 }
  0x35   : > { %p498_p3 = pnand %p497_p2, %p491_p12 }
  0xa7   : > { %v219_v8 = vpop.permute.xlu0 %218 }
  0xf3   : > { %v266_v9 = vpop.f32.mrf.mxu0 }
  0xf4   : > { %v267_v10 = vadd.f32 %v266_v9, %v219_v8 }
  0xf5   : > { %v268_v11 = vpop.f32.mrf.mxu0 }
  0xf6   : > { %273 = vst [vmem:[%s204_s8] sm:$0xff] %v267_v10  ;;  %v269_v12 = vadd.f32 %v268_v11, %v219_v8 }
  0xf7   : > { %v270_v13 = vpop.f32.mrf.mxu0 }
  0xf8   : > { %274 = vst [vmem:[%s204_s8 + $0x8] sm:$0xff] %v269_v12 }
  0xf9   : > { %v271_v14 = vpop.f32.mrf.mxu0 }
  0xfa   : > { %501 = shalt.err (!%p498_p3)
}
  0xfb   : > { %s502_s29 = scalar_lea.hbm %s698_s18, 256  ;;  %s506_s4 = scalar_lea.hbm %s749_s3, 512 }
  0xfc   : > { %p503_p5 = scmp.ne.s32.totalorder %s698_s18, %s502_s29  ;;  %p507_p10 = scmp.lt.s32.totalorder %s698_s18, %s749_s3 }
  0xfd   : > { %p508_p4 = scmp.lt.s32.totalorder %s506_s4, %s502_s29 }
  0xfe   : > { %p504_p6 = pnand %p503_p5, %p644_p9 }
  0xff   : > { %p509_p13 = por %p508_p4, %p507_p10 }
 0x100   : > { %p505_p7 = pneg %p504_p6 }
 0x102   : > { %p510_p8 = pnand %p509_p13, %p505_p7 }
 0x104   : > { %513 = shalt.err (!%p510_p8)
}
 0x105   : > { %397 = dma.vmem_to_hbm [thread:$0]  (%p644_p9), %s700_s9, 256, %s698_s18, %s276_s15  }
 0x106 PF: > { %s304_s6 = sand.u32 1, %s548_s12   ;;  %p755_p11 = scmp.ne.s32.totalorder %s753_s27, 0 }
 0x107   : > { %p756_p12 = scmp.ge.s32.totalorder %s568_s17, 2  ;;  %s305_s7 = scalar_lea.sflag [#allocation4], %s304_s6 }
 0x109   : > { %p404_p0 = pnand %p756_p12, %p755_p11 }
 0x10b   : > { %p405_p1 = pneg %p404_p0 }
 0x10d   : > { %543 = dma.done.wait (%p405_p1), %s305_s7, 256  }
 0x10e   : > { %545 = vsyncadd (%p405_p1), %s305_s7, 4294967040  ;;  %s19_s17 = sadd.s32 1, %s568_s17   ;;  %s757_s12 = smov %s552_s13 }
 0x10f   : > { %p16_p2 = scmp.ge.s32.totalorder %s19_s17, 4   ;;  %s758_s13 = smov %s556_s14 }
 0x110   : > { %s759_s14 = smov %s649_s26  ;;  %s760_s15 = smov %s564_s16 }
 0x111   : > { %s761_s16 = smov %s763_s20  ;;  %18 = sbr.rel (!%p16_p2) target bundleno = 6 (0x6), region = 77 }
 0x116   :  { %310 = vsyncpa [#allocation3], 1 }
 0x117   :  { %312 = vsyncpa [#allocation3 + $0x1], 1 }
 0x118   :  { %313 = vsyncpa [#allocation4], 1 }
 0x119   :  { %315 = vsyncpa [#allocation4 + $0x1], 1 }

</bundles_post_ra>
